<compile_context>
chip_gen: v6e
topology: v6e:2x2x1
jax: 0.10.0
libtpu: 0.0.40
codegen_flags: <defaults>
</compile_context>

<pallas_src>
import functools

import jax
import jax.numpy as jnp
from jax import lax
from jax.experimental import pallas as pl
from jax.experimental.pallas import tpu as pltpu

BN_EPS = 1e-5
LANE = 128


def _round_up(n, m):
    return ((n + m - 1) // m) * m


def use_bf16_elementwise():
    """bf16 VALU exists on v6e/v7x; v5e and older lack it -> keep f32 there."""
    try:
        kind = jax.devices()[0].device_kind.lower()
    except Exception:
        return False
    return any(tag in kind for tag in ("v6", "v7"))


def flat_kernel(x_ref, w1_ref, w2_ref, w3_ref, w4_ref, bgb_ref, b4_ref,
                out_ref, *, mode, bf16_elementwise):
    B = x_ref.shape[0]
    inv_b = jnp.float32(1.0 / B)
    edt = jnp.bfloat16 if bf16_elementwise else jnp.float32

    def fused_bias_relu_bn(pre_f32, row):
        """bias -> ReLU -> train-mode BatchNorm, returns bf16 for the next dot.

        `row` indexes the stacked (9, Hp) [b, gamma, beta] table for the layer.
        Stats are XLU sublane reductions with f32 accumulation (no MXU use, no
        E[h^2]-E[h]^2 precision loss from low-precision matmuls).
        """
        b = bgb_ref[row:row + 1, :]
        g = bgb_ref[row + 1:row + 2, :]
        be = bgb_ref[row + 2:row + 3, :]

        h = jnp.maximum(pre_f32.astype(edt) + b.astype(edt), 0.0)   # ReLU
        s1 = jnp.sum(h, axis=0, keepdims=True, dtype=jnp.float32)       # XLU
        s2 = jnp.sum(h * h, axis=0, keepdims=True, dtype=jnp.float32)   # XLU
        mean = s1 * inv_b
        var = jnp.maximum(s2 * inv_b - mean * mean, 0.0)   # guard cancellation
        scale = g * lax.rsqrt(var + BN_EPS)                # fold gamma (f32)
        shift = be - mean * scale                          # fold beta/mean (f32)
        if bf16_elementwise:
            # Apply in bf16 (result feeds a bf16 MXU dot anyway).
            return h * scale.astype(jnp.bfloat16) + shift.astype(jnp.bfloat16)
        # f32 apply, cast for the next dot fused into the same expression.
        return (h * scale + shift).astype(jnp.bfloat16)

    # fc1 -> ReLU -> bn1   (concat was done in the wrapper; single dot)
    a = fused_bias_relu_bn(
        jnp.dot(x_ref[...], w1_ref[...], preferred_element_type=jnp.float32), 0)
    # ReLU(fc2) -> bn2
    a = fused_bias_relu_bn(
        jnp.dot(a, w2_ref[...], preferred_element_type=jnp.float32), 3)
    # ReLU(fc3) -> bn3
    a = fused_bias_relu_bn(
        jnp.dot(a, w3_ref[...], preferred_element_type=jnp.float32), 6)

    # fc4 (+ sigmoid in 'clf' mode: single EUP tanh, exact identity)
    y = jnp.dot(a, w4_ref[...], preferred_element_type=jnp.float32) + b4_ref[...]
    if mode == "clf":
        y = 0.5 * jnp.tanh(0.5 * y) + 0.5

    out_ref[...] = y.astype(out_ref.dtype)


def prepare_params(params):
    """One-time parameter prep (call once, reuse every forward).

    Pads hidden/readout dims to lane (128) multiples, casts matmul weights to
    bf16, and stacks the per-layer bias/gamma/beta vectors into one (9, Hp)
    f32 array.  Zero-padded columns give h==0 -> BN output 0 (pads are zero)
    -> zero rows of the next weight contribute nothing, so results on the
    original columns are unchanged; the wrapper slices the padded output.
    """
    H = params["w1"].shape[1]
    R = params["w4"].shape[1]
    Hp = _round_up(H, LANE)
    Rp = _round_up(R, LANE)

    def pad_cols(a, n):
        return jnp.pad(a, ((0, 0), (0, n - a.shape[1])))

    def pad_rows(a, n):
        return jnp.pad(a, ((0, n - a.shape[0]), (0, 0)))

    w1 = pad_cols(params["w1"], Hp).astype(jnp.bfloat16)
    w2 = pad_rows(pad_cols(params["w2"], Hp), Hp).astype(jnp.bfloat16)
    w3 = pad_rows(pad_cols(params["w3"], Hp), Hp).astype(jnp.bfloat16)
    w4 = pad_rows(pad_cols(params["w4"], Rp), Hp).astype(jnp.bfloat16)
    bgb = jnp.concatenate(
        [pad_cols(params[k], Hp) for k in
         ("b1", "g1", "be1", "b2", "g2", "be2", "b3", "g3", "be3")], axis=0)
    b4 = pad_cols(params["b4"], Rp)

    prepared = dict(w1=w1, w2=w2, w3=w3, w4=w4, bgb=bgb, b4=b4)
    return prepared, R


@functools.partial(jax.jit,
                   static_argnames=("mode", "readout_dim", "bf16_elementwise"))
def flat_forward(vertices, dads, prepared, *, mode="clf", readout_dim,
                 bf16_elementwise=False):
    """Pallas equivalent of Flat.forward(vertices, dads).

    `prepared` comes from prepare_params() (hoisted out of the hot path)."""
    B = vertices.shape[0]
    # Per-call input prep only: flatten + concat (tiny (B, state_dim) tensor)
    # + bf16 cast.  dv+dd is small here, so the wrapper-side concat is cheaper
    # than two small-K dots inside the kernel.
    # TODO(synk): for very large per-input feature dims (dv/dd each >> 128),
    # re-introduce the split-W1 two-dot fused-concat path.
    x = jnp.concatenate([vertices.reshape(B, -1), dads.reshape(B, -1)],
                        axis=1).astype(jnp.bfloat16)

    Rp = prepared["b4"].shape[1]
    args = (x, prepared["w1"], prepared["w2"], prepared["w3"], prepared["w4"],
            prepared["bgb"], prepared["b4"])

    # Explicit VMEM budget from the actual resident footprint (+ headroom),
    # clamped to 64 MiB so it is valid on v5e/v6e (128 MiB) and v7x (64 MiB).
    vmem_bytes = sum(int(a.size) * a.dtype.itemsize for a in args) + B * Rp * 4
    vmem_limit = min(max(2 * vmem_bytes + (4 << 20), 8 << 20), 64 << 20)

    kernel = functools.partial(flat_kernel, mode=mode,
                               bf16_elementwise=bf16_elementwise)

    # Single VMEM-resident block (no grid): BatchNorm needs full-batch
    # statistics and the whole problem fits in VMEM at these sizes.
    # TODO(synk): for very large batches on v7x (2 TCs), add a batch-parallel
    # grid with a two-pass BN (masked per-tile sum / sum-of-squares partials,
    # true-B inv_b) and a K/N-tiled streaming path for Hp >= ~4096 weights.
    out = pl.pallas_call(
        kernel,
        out_shape=jax.ShapeDtypeStruct((B, Rp), jnp.float32),
        in_specs=[pl.BlockSpec(memory_space=pltpu.MemorySpace.VMEM)] * len(args),
        out_specs=pl.BlockSpec(memory_space=pltpu.MemorySpace.VMEM),
        compiler_params=pltpu.CompilerParams(vmem_limit_bytes=vmem_limit),
    )(*args)
    # Lane-dense (128-multiple) output slab; slice back to the true readout dim.
    return out[:, :readout_dim]


def flat_reference(vertices, dads, params, mode="clf"):
    """Pure-JAX f32 reference (PyTorch forward semantics) for validation."""
    B = vertices.shape[0]
    x = jnp.concatenate([vertices.reshape(B, -1), dads.reshape(B, -1)], axis=1)

    def bn(h, g, be):
        mean = jnp.mean(h, axis=0, keepdims=True)
        var = jnp.mean((h - mean) ** 2, axis=0, keepdims=True)
        return (h - mean) * lax.rsqrt(var + BN_EPS) * g + be

    h = jnp.maximum(x @ params["w1"] + params["b1"], 0.0)
    h = bn(h, params["g1"], params["be1"])
    h = jnp.maximum(h @ params["w2"] + params["b2"], 0.0)
    h = bn(h, params["g2"], params["be2"])
    h = jnp.maximum(h @ params["w3"] + params["b3"], 0.0)
    h = bn(h, params["g3"], params["be3"])
    y = h @ params["w4"] + params["b4"]
    if mode == "clf":
        y = jax.nn.sigmoid(y)
    return y


def init_params(key, state_dim, hidden_dim, readout_dim):
    """Deterministic PyTorch-style init: Linear U(-1/sqrt(fan_in), 1/sqrt(fan_in)),
    BatchNorm gamma=1, beta=0.  Weights stored as (in_features, out_features)."""
    keys = jax.random.split(key, 8)

    def linear(kw, kb, fan_in, fan_out):
        bound = 1.0 / float(fan_in) ** 0.5
        w = jax.random.uniform(kw, (fan_in, fan_out), jnp.float32, -bound, bound)
        b = jax.random.uniform(kb, (1, fan_out), jnp.float32, -bound, bound)
        return w, b

    w1, b1 = linear(keys[0], keys[1], state_dim, hidden_dim)
    w2, b2 = linear(keys[2], keys[3], hidden_dim, hidden_dim)
    w3, b3 = linear(keys[4], keys[5], hidden_dim, hidden_dim)
    w4, b4 = linear(keys[6], keys[7], hidden_dim, readout_dim)

    ones = jnp.ones((1, hidden_dim), jnp.float32)
    zeros = jnp.zeros((1, hidden_dim), jnp.float32)
    return dict(
        w1=w1, b1=b1, g1=ones, be1=zeros,
        w2=w2, b2=b2, g2=ones, be2=zeros,
        w3=w3, b3=b3, g3=ones, be3=zeros,
        w4=w4, b4=b4,
    )


if __name__ == "__main__":
    # Small config consistent with the module:
    #   vertices (B, V, 3), dads (B, V)  ->  state_dim = 3*V + V = 32
    B, V = 8, 8
    state_dim = 3 * V + V          # 32
    hidden_dim = 32
    readout_dim = 8                # sum of target dims, e.g. [5, 3]
    mode = "clf"                   # applies sigmoid at the end

    key = jax.random.PRNGKey(0)
    k_v, k_d, k_p = jax.random.split(key, 3)
    vertices = jax.random.normal(k_v, (B, V, 3), jnp.float32)
    dads = jax.random.normal(k_d, (B, V), jnp.float32)
    params = init_params(k_p, state_dim, hidden_dim, readout_dim)

    # One-time parameter prep, hoisted out of the per-call hot path.
    prepared, R = prepare_params(params)
    bf16_elem = use_bf16_elementwise()

    out = flat_forward(vertices, dads, prepared, mode=mode,
                       readout_dim=R, bf16_elementwise=bf16_elem)
    jax.block_until_ready(out)
    assert out.shape == (B, readout_dim)

    # Validate against a pure-JAX f32 reference (tolerance covers bf16 weights
    # and activations through 4 layers; sigmoid outputs are in [0, 1]).
    ref = flat_reference(vertices, dads, params, mode=mode)
    max_err = float(jnp.max(jnp.abs(out - ref)))
    assert max_err < 5e-2, f"max abs error vs reference too large: {max_err}"

    # TODO(synk): Flat.record() maintains EMA target stats and BatchNorm running
    # buffers are not updated; both are outside forward() and omitted here.
    print("KERNEL_OK")
</pallas_src>

<mosaic_0001>
module attributes {stable_mosaic.version = 11 : i64} {
  func.func @flat_kernel(%arg0: memref<8x32xbf16, #tpu.memory_space<vmem>>, %arg1: memref<32x128xbf16, #tpu.memory_space<vmem>>, %arg2: memref<128x128xbf16, #tpu.memory_space<vmem>>, %arg3: memref<128x128xbf16, #tpu.memory_space<vmem>>, %arg4: memref<128x128xbf16, #tpu.memory_space<vmem>>, %arg5: memref<9x128xf32, #tpu.memory_space<vmem>>, %arg6: memref<1x128xf32, #tpu.memory_space<vmem>>, %arg7: memref<8x128xf32, #tpu.memory_space<vmem>>) attributes {dimension_semantics = [], scalar_prefetch = 0 : i64, scratch_operands = 0 : i64, tpu.core_type = #tpu.core_type<tc>} {
    %c0 = arith.constant 0 : index
    %c0_0 = arith.constant 0 : index
    %0 = vector.load %arg0[%c0, %c0_0] : memref<8x32xbf16, #tpu.memory_space<vmem>>, vector<8x32xbf16>
    %c0_1 = arith.constant 0 : index
    %c0_2 = arith.constant 0 : index
    %1 = vector.load %arg1[%c0_1, %c0_2] : memref<32x128xbf16, #tpu.memory_space<vmem>>, vector<32x128xbf16>
    %cst = arith.constant dense<0.000000e+00> : vector<8x128xf32>
    %2 = tpu.matmul %0, %1, %cst {dimension_numbers = #tpu.dot_dimension_numbers<[1], [0], [0], [1], [0, 0, 1, 1], [], []>} : vector<8x32xbf16>, vector<32x128xbf16>, vector<8x128xf32> -> vector<8x128xf32>
    %c0_3 = arith.constant 0 : index
    %c0_4 = arith.constant 0 : index
    %3 = vector.load %arg5[%c0_3, %c0_4] : memref<9x128xf32, #tpu.memory_space<vmem>>, vector<1x128xf32>
    %c1 = arith.constant 1 : index
    %c0_5 = arith.constant 0 : index
    %4 = vector.load %arg5[%c1, %c0_5] : memref<9x128xf32, #tpu.memory_space<vmem>>, vector<1x128xf32>
    %c2 = arith.constant 2 : index
    %c0_6 = arith.constant 0 : index
    %5 = vector.load %arg5[%c2, %c0_6] : memref<9x128xf32, #tpu.memory_space<vmem>>, vector<1x128xf32>
    %6 = vector.broadcast %3 : vector<1x128xf32> to vector<8x128xf32>
    %7 = arith.addf %2, %6 : vector<8x128xf32>
    %cst_7 = arith.constant 0.000000e+00 : f32
    %8 = vector.broadcast %cst_7 : f32 to vector<8x128xf32>
    %9 = arith.maximumf %7, %8 : vector<8x128xf32>
    %cst_8 = arith.constant dense<0.000000e+00> : vector<128xf32>
    %10 = vector.multi_reduction <add>, %9, %cst_8 [0] : vector<8x128xf32> to vector<128xf32>
    %11 = vector.shape_cast %10 : vector<128xf32> to vector<1x128xf32>
    %12 = arith.mulf %9, %9 : vector<8x128xf32>
    %cst_9 = arith.constant dense<0.000000e+00> : vector<128xf32>
    %13 = vector.multi_reduction <add>, %12, %cst_9 [0] : vector<8x128xf32> to vector<128xf32>
    %14 = vector.shape_cast %13 : vector<128xf32> to vector<1x128xf32>
    %cst_10 = arith.constant 1.250000e-01 : f32
    %15 = vector.broadcast %cst_10 : f32 to vector<1x128xf32>
    %16 = arith.mulf %11, %15 : vector<1x128xf32>
    %cst_11 = arith.constant 1.250000e-01 : f32
    %17 = vector.broadcast %cst_11 : f32 to vector<1x128xf32>
    %18 = arith.mulf %14, %17 : vector<1x128xf32>
    %19 = arith.mulf %16, %16 : vector<1x128xf32>
    %20 = arith.subf %18, %19 : vector<1x128xf32>
    %cst_12 = arith.constant 0.000000e+00 : f32
    %21 = vector.broadcast %cst_12 : f32 to vector<1x128xf32>
    %22 = arith.maximumf %20, %21 : vector<1x128xf32>
    %cst_13 = arith.constant 9.99999974E-6 : f32
    %23 = vector.broadcast %cst_13 : f32 to vector<1x128xf32>
    %24 = arith.addf %22, %23 : vector<1x128xf32>
    %25 = math.rsqrt %24 : vector<1x128xf32>
    %26 = arith.mulf %4, %25 : vector<1x128xf32>
    %27 = arith.mulf %16, %26 : vector<1x128xf32>
    %28 = arith.subf %5, %27 : vector<1x128xf32>
    %29 = vector.broadcast %26 : vector<1x128xf32> to vector<8x128xf32>
    %30 = arith.mulf %9, %29 : vector<8x128xf32>
    %31 = vector.broadcast %28 : vector<1x128xf32> to vector<8x128xf32>
    %32 = arith.addf %30, %31 : vector<8x128xf32>
    %33 = arith.truncf %32 : vector<8x128xf32> to vector<8x128xbf16>
    %c0_14 = arith.constant 0 : index
    %c0_15 = arith.constant 0 : index
    %34 = vector.load %arg2[%c0_14, %c0_15] : memref<128x128xbf16, #tpu.memory_space<vmem>>, vector<128x128xbf16>
    %cst_16 = arith.constant dense<0.000000e+00> : vector<8x128xf32>
    %35 = tpu.matmul %33, %34, %cst_16 {dimension_numbers = #tpu.dot_dimension_numbers<[1], [0], [0], [1], [0, 0, 1, 1], [], []>} : vector<8x128xbf16>, vector<128x128xbf16>, vector<8x128xf32> -> vector<8x128xf32>
    %c3 = arith.constant 3 : index
    %c0_17 = arith.constant 0 : index
    %36 = vector.load %arg5[%c3, %c0_17] : memref<9x128xf32, #tpu.memory_space<vmem>>, vector<1x128xf32>
    %c4 = arith.constant 4 : index
    %c0_18 = arith.constant 0 : index
    %37 = vector.load %arg5[%c4, %c0_18] : memref<9x128xf32, #tpu.memory_space<vmem>>, vector<1x128xf32>
    %c5 = arith.constant 5 : index
    %c0_19 = arith.constant 0 : index
    %38 = vector.load %arg5[%c5, %c0_19] : memref<9x128xf32, #tpu.memory_space<vmem>>, vector<1x128xf32>
    %39 = vector.broadcast %36 : vector<1x128xf32> to vector<8x128xf32>
    %40 = arith.addf %35, %39 : vector<8x128xf32>
    %cst_20 = arith.constant 0.000000e+00 : f32
    %41 = vector.broadcast %cst_20 : f32 to vector<8x128xf32>
    %42 = arith.maximumf %40, %41 : vector<8x128xf32>
    %cst_21 = arith.constant dense<0.000000e+00> : vector<128xf32>
    %43 = vector.multi_reduction <add>, %42, %cst_21 [0] : vector<8x128xf32> to vector<128xf32>
    %44 = vector.shape_cast %43 : vector<128xf32> to vector<1x128xf32>
    %45 = arith.mulf %42, %42 : vector<8x128xf32>
    %cst_22 = arith.constant dense<0.000000e+00> : vector<128xf32>
    %46 = vector.multi_reduction <add>, %45, %cst_22 [0] : vector<8x128xf32> to vector<128xf32>
    %47 = vector.shape_cast %46 : vector<128xf32> to vector<1x128xf32>
    %cst_23 = arith.constant 1.250000e-01 : f32
    %48 = vector.broadcast %cst_23 : f32 to vector<1x128xf32>
    %49 = arith.mulf %44, %48 : vector<1x128xf32>
    %cst_24 = arith.constant 1.250000e-01 : f32
    %50 = vector.broadcast %cst_24 : f32 to vector<1x128xf32>
    %51 = arith.mulf %47, %50 : vector<1x128xf32>
    %52 = arith.mulf %49, %49 : vector<1x128xf32>
    %53 = arith.subf %51, %52 : vector<1x128xf32>
    %cst_25 = arith.constant 0.000000e+00 : f32
    %54 = vector.broadcast %cst_25 : f32 to vector<1x128xf32>
    %55 = arith.maximumf %53, %54 : vector<1x128xf32>
    %cst_26 = arith.constant 9.99999974E-6 : f32
    %56 = vector.broadcast %cst_26 : f32 to vector<1x128xf32>
    %57 = arith.addf %55, %56 : vector<1x128xf32>
    %58 = math.rsqrt %57 : vector<1x128xf32>
    %59 = arith.mulf %37, %58 : vector<1x128xf32>
    %60 = arith.mulf %49, %59 : vector<1x128xf32>
    %61 = arith.subf %38, %60 : vector<1x128xf32>
    %62 = vector.broadcast %59 : vector<1x128xf32> to vector<8x128xf32>
    %63 = arith.mulf %42, %62 : vector<8x128xf32>
    %64 = vector.broadcast %61 : vector<1x128xf32> to vector<8x128xf32>
    %65 = arith.addf %63, %64 : vector<8x128xf32>
    %66 = arith.truncf %65 : vector<8x128xf32> to vector<8x128xbf16>
    %c0_27 = arith.constant 0 : index
    %c0_28 = arith.constant 0 : index
    %67 = vector.load %arg3[%c0_27, %c0_28] : memref<128x128xbf16, #tpu.memory_space<vmem>>, vector<128x128xbf16>
    %cst_29 = arith.constant dense<0.000000e+00> : vector<8x128xf32>
    %68 = tpu.matmul %66, %67, %cst_29 {dimension_numbers = #tpu.dot_dimension_numbers<[1], [0], [0], [1], [0, 0, 1, 1], [], []>} : vector<8x128xbf16>, vector<128x128xbf16>, vector<8x128xf32> -> vector<8x128xf32>
    %c6 = arith.constant 6 : index
    %c0_30 = arith.constant 0 : index
    %69 = vector.load %arg5[%c6, %c0_30] : memref<9x128xf32, #tpu.memory_space<vmem>>, vector<1x128xf32>
    %c7 = arith.constant 7 : index
    %c0_31 = arith.constant 0 : index
    %70 = vector.load %arg5[%c7, %c0_31] : memref<9x128xf32, #tpu.memory_space<vmem>>, vector<1x128xf32>
    %c8 = arith.constant 8 : index
    %c0_32 = arith.constant 0 : index
    %71 = vector.load %arg5[%c8, %c0_32] : memref<9x128xf32, #tpu.memory_space<vmem>>, vector<1x128xf32>
    %72 = vector.broadcast %69 : vector<1x128xf32> to vector<8x128xf32>
    %73 = arith.addf %68, %72 : vector<8x128xf32>
    %cst_33 = arith.constant 0.000000e+00 : f32
    %74 = vector.broadcast %cst_33 : f32 to vector<8x128xf32>
    %75 = arith.maximumf %73, %74 : vector<8x128xf32>
    %cst_34 = arith.constant dense<0.000000e+00> : vector<128xf32>
    %76 = vector.multi_reduction <add>, %75, %cst_34 [0] : vector<8x128xf32> to vector<128xf32>
    %77 = vector.shape_cast %76 : vector<128xf32> to vector<1x128xf32>
    %78 = arith.mulf %75, %75 : vector<8x128xf32>
    %cst_35 = arith.constant dense<0.000000e+00> : vector<128xf32>
    %79 = vector.multi_reduction <add>, %78, %cst_35 [0] : vector<8x128xf32> to vector<128xf32>
    %80 = vector.shape_cast %79 : vector<128xf32> to vector<1x128xf32>
    %cst_36 = arith.constant 1.250000e-01 : f32
    %81 = vector.broadcast %cst_36 : f32 to vector<1x128xf32>
    %82 = arith.mulf %77, %81 : vector<1x128xf32>
    %cst_37 = arith.constant 1.250000e-01 : f32
    %83 = vector.broadcast %cst_37 : f32 to vector<1x128xf32>
    %84 = arith.mulf %80, %83 : vector<1x128xf32>
    %85 = arith.mulf %82, %82 : vector<1x128xf32>
    %86 = arith.subf %84, %85 : vector<1x128xf32>
    %cst_38 = arith.constant 0.000000e+00 : f32
    %87 = vector.broadcast %cst_38 : f32 to vector<1x128xf32>
    %88 = arith.maximumf %86, %87 : vector<1x128xf32>
    %cst_39 = arith.constant 9.99999974E-6 : f32
    %89 = vector.broadcast %cst_39 : f32 to vector<1x128xf32>
    %90 = arith.addf %88, %89 : vector<1x128xf32>
    %91 = math.rsqrt %90 : vector<1x128xf32>
    %92 = arith.mulf %70, %91 : vector<1x128xf32>
    %93 = arith.mulf %82, %92 : vector<1x128xf32>
    %94 = arith.subf %71, %93 : vector<1x128xf32>
    %95 = vector.broadcast %92 : vector<1x128xf32> to vector<8x128xf32>
    %96 = arith.mulf %75, %95 : vector<8x128xf32>
    %97 = vector.broadcast %94 : vector<1x128xf32> to vector<8x128xf32>
    %98 = arith.addf %96, %97 : vector<8x128xf32>
    %99 = arith.truncf %98 : vector<8x128xf32> to vector<8x128xbf16>
    %c0_40 = arith.constant 0 : index
    %c0_41 = arith.constant 0 : index
    %100 = vector.load %arg4[%c0_40, %c0_41] : memref<128x128xbf16, #tpu.memory_space<vmem>>, vector<128x128xbf16>
    %cst_42 = arith.constant dense<0.000000e+00> : vector<8x128xf32>
    %101 = tpu.matmul %99, %100, %cst_42 {dimension_numbers = #tpu.dot_dimension_numbers<[1], [0], [0], [1], [0, 0, 1, 1], [], []>} : vector<8x128xbf16>, vector<128x128xbf16>, vector<8x128xf32> -> vector<8x128xf32>
    %c0_43 = arith.constant 0 : index
    %c0_44 = arith.constant 0 : index
    %102 = vector.load %arg6[%c0_43, %c0_44] : memref<1x128xf32, #tpu.memory_space<vmem>>, vector<1x128xf32>
    %103 = vector.broadcast %102 : vector<1x128xf32> to vector<8x128xf32>
    %104 = arith.addf %101, %103 : vector<8x128xf32>
    %cst_45 = arith.constant 5.000000e-01 : f32
    %105 = vector.broadcast %cst_45 : f32 to vector<8x128xf32>
    %106 = arith.mulf %105, %104 : vector<8x128xf32>
    %107 = math.tanh %106 : vector<8x128xf32>
    %cst_46 = arith.constant 5.000000e-01 : f32
    %108 = vector.broadcast %cst_46 : f32 to vector<8x128xf32>
    %109 = arith.mulf %108, %107 : vector<8x128xf32>
    %cst_47 = arith.constant 5.000000e-01 : f32
    %110 = vector.broadcast %cst_47 : f32 to vector<8x128xf32>
    %111 = arith.addf %109, %110 : vector<8x128xf32>
    %c0_48 = arith.constant 0 : index
    %c0_49 = arith.constant 0 : index
    %112 = vector.load %arg7[%c0_48, %c0_49] : memref<8x128xf32, #tpu.memory_space<vmem>>, vector<8x128xf32>
    tpu.vector_store %arg7[%c0_48, %c0_49], %111 {strides = array<i32>} : memref<8x128xf32, #tpu.memory_space<vmem>>, vector<8x128xf32>,
    return
  }
}

</mosaic_0001>

<bundles_post_ra>
// kernel: flat_forward.1
= control target key start
LH: loop header
LB: loop body
LE: loop exit
PB: predicated region body
PF: predicated region fallthrough
CT: control target
= control target key end

     0   :  { %12 = vsyncpa [#allocation3], 0  ;;  %s1013_s0 = inlined_call_operand.vmem [shape: bf16[8,32], index: 0, kind: input, shape index: {}]   ;;  %s1014_s1 = inlined_call_operand.hbm [shape: bf16[32,128], index: 1, kind: input, shape index: {}]   ;;  %s1015_s2 = inlined_call_operand.vmem [shape: bf16[128,128], index: 2, kind: input, shape index: {}]   ;;  %s1016_s3 = inlined_call_operand.vmem [shape: bf16[128,128], index: 3, kind: input, shape index: {}]   ;;  %s1017_s4 = inlined_call_operand.hbm [shape: bf16[128,128], index: 4, kind: input, shape index: {}]   ;;  %s1018_s5 = inlined_call_operand.hbm [shape: f32[9,128], index: 5, kind: input, shape index: {}]   ;;  %s1019_s6 = inlined_call_operand.vmem [shape: f32[1,128], index: 6, kind: input, shape index: {}]   ;;  %s1020_s7 = inlined_call_operand.hbm [shape: f32[8,128], index: 7, kind: output, shape index: {}]  }
   0x1   :  { %13 = vsyncpa [#allocation6], 0 }
   0x2   :  { %14 = vsyncpa [#allocation4], 0  ;;  %s855_s24 = smov [#allocation5]   ;;  %s856_s26 = smov [#allocation2]  }
   0x3   :  { %s38_s25 = sshll.u32 %s855_s24, 4  ;;  %s22_s27 = sshll.u32 %s856_s26, 4  ;;  %s39_s25 = int_to_ptr.vmem [resolvable:$true] %s38_s25  ;;  %s23_s27 = int_to_ptr.vmem [resolvable:$true] %s22_s27 }
   0x4   :  { %s777_s28 = scalar_lea.vmem %s39_s25, 1024  ;;  %p782_p1 = scmp.lt.s32.totalorder %s39_s25, %s39_s25 }
   0x5   :  { %p778_p0 = scmp.ne.s32.totalorder %s39_s25, %s777_s28  ;;  %p783_p2 = scmp.lt.s32.totalorder %s777_s28, %s777_s28 }
   0x7   :  { %p784_p3 = por %p783_p2, %p782_p1 }
   0x9   :  { %p785_p4 = pnand %p784_p3, %p778_p0 }
   0xb   :  { %788 = shalt.err (!%p785_p4)
}
   0xc   :  { %s857_s29 = smov 64   ;;  %s858_s30 = smov 4  }
   0xd   :  { %44 = dma.hbm_to_vmem [thread:$0]  %s1017_s4, 1024, %s39_s25, [#allocation6], %s857_s29, %s857_s29, %s858_s30  }
   0xe   :  { %s797_s10 = scalar_lea.vmem %s23_s27, 256  ;;  %p802_p6 = scmp.lt.s32.totalorder %s23_s27, %s23_s27 }
   0xf   :  { %p798_p5 = scmp.ne.s32.totalorder %s23_s27, %s797_s10  ;;  %p803_p7 = scmp.lt.s32.totalorder %s797_s10, %s797_s10 }
  0x11   :  { %p804_p8 = por %p803_p7, %p802_p6 }
  0x13   :  { %p805_p9 = pnand %p804_p8, %p798_p5 }
  0x15   :  { %808 = shalt.err (!%p805_p9)
}
  0x16   :  { %28 = dma.hbm_to_vmem [thread:$0]  %s1014_s1, 256, %s23_s27, [#allocation3], %s857_s29, %s857_s29, %s858_s30  }
  0x17   :  { %s859_s13 = smov [#allocation7]  }
  0x18   :  { %s50_s14 = sshll.u32 %s859_s13, 4  ;;  %s51_s14 = int_to_ptr.vmem [resolvable:$true] %s50_s14 }
  0x19   :  { %s817_s15 = scalar_lea.vmem %s51_s14, 256  ;;  %p822_p11 = scmp.lt.s32.totalorder %s51_s14, %s51_s14 }
  0x1a   :  { %p818_p10 = scmp.ne.s32.totalorder %s51_s14, %s817_s15  ;;  %p823_p12 = scmp.lt.s32.totalorder %s817_s15, %s817_s15 }
  0x1c   :  { %p824_p13 = por %p823_p12, %p822_p11 }
  0x1e   :  { %p825_p0 = pnand %p824_p13, %p818_p10 }
  0x20   :  { %828 = shalt.err (!%p825_p0)
}
  0x21   :  { %s860_s4 = smov 128   ;;  %s861_s16 = smov 8  }
  0x22   :  { %56 = dma.hbm_to_vmem [thread:$0]  %s1018_s5, 256, %s51_s14, [#allocation6], %s860_s4, %s860_s4, %s861_s16  }
  0x23   :  { %849 = dma.done.wait [#allocation3], 256  }
  0x24   :  { %850 = vsyncadd [#allocation3], 4294967040 }
  0x25   :  { %851 = dma.done.wait [#allocation6], 1280  }
  0x26   :  { %852 = vsyncadd [#allocation6], 4294966016  ;;  %v862_v0 = vmov 0.0   ;;  %vm863_vm0 = vmmov 0   ;;  %v735_v1 = vld [vmem:[#allocation2 + $0x8] sm:$0xff]   ;;  %v736_v2 = vld [vmem:[#allocation2] sm:$0xff]   ;;  %v161_v38 = vlaneseq }
  0x27   :  { %657 = vmatprep.subr.bf16.mxu0 %v862_v0  ;;  %661 = vmatprep.mubr.msk.bf16.mxu0 %vm863_vm0, %v862_v0  ;;  %vm93_vm1 = vcmask 261120   ;;  %v69_v3 = vld [vmem:[%s1013_s0] sm:$0xf]  ;;  %v737_v4 = vld [vmem:[%s1015_s2 + $0x38] sm:$0xff]   ;;  %v738_v5 = vld [vmem:[%s1015_s2 + $0x30] sm:$0xff]   ;;  %s864_s23 = smov [#allocation8]  }
  0x28   :  { %665 = vmatprep.subr.bf16.mxu1 %v862_v0  ;;  %681 = vmatprep.mubr.msk.bf16.mxu1 %vm863_vm0, %v862_v0  ;;  %v739_v6 = vld [vmem:[%s1015_s2 + $0x28] sm:$0xff]   ;;  %v740_v7 = vld [vmem:[%s1015_s2 + $0x20] sm:$0xff]   ;;  %v741_v8 = vld [vmem:[%s1015_s2 + $0x18] sm:$0xff]   ;;  %v162_v39 = vshrl.u32 %v161_v38, 7  ;;  %s586_s24 = sshll.u32 %s864_s23, 4  ;;  %s587_s24 = int_to_ptr.vmem [resolvable:$true] %s586_s24 }
  0x29   :  { %658 = vmatpush3.bf16.msra.mxu0 %v735_v1  ;;  %666 = vmatpush3.bf16.msra.mxu1 %v737_v4  ;;  %v742_v9 = vld [vmem:[%s1015_s2 + $0x10] sm:$0xff]   ;;  %v743_v10 = vld [vmem:[%s1015_s2 + $0x8] sm:$0xff]   ;;  %v744_v11 = vld [vmem:[%s1015_s2] sm:$0xff]   ;;  %s829_s25 = scalar_lea.vmem %s587_s24, 128  ;;  %p834_p2 = scmp.lt.s32.totalorder %s587_s24, %s587_s24 }
  0x2a   :  { %659 = vmatprep.subr.bf16.mxu0 %v862_v0  ;;  %667 = vmatprep.subr.bf16.mxu1 %v862_v0  ;;  %v596_v12 = vld [vmem:[#allocation7] ss:$0 sm:$0xff]  ;;  %v75_v40 = vld [vmem:[#allocation7 + $0x1] sm:$0x1]  ;;  %v959_v41 = vsub.s32 0, %v162_v39  ;;  %v745_v52 = vld [vmem:[%s1016_s3 + $0x38] sm:$0xff]   ;;  %p830_p1 = scmp.ne.s32.totalorder %s587_s24, %s829_s25  ;;  %p835_p3 = scmp.lt.s32.totalorder %s829_s25, %s829_s25 }
  0x2b   :  { %v76_v44 = vld [vmem:[#allocation7 + $0x2] sm:$0x1]  ;;  %v747_v54 = vld [vmem:[%s1016_s3 + $0x28] sm:$0xff]   ;;  %v748_v55 = vld [vmem:[%s1016_s3 + $0x20] sm:$0xff]  }
  0x2c   :  { %v746_v53 = vld [vmem:[%s1016_s3 + $0x30] sm:$0xff]   ;;  %v749_v56 = vld [vmem:[%s1016_s3 + $0x18] sm:$0xff]   ;;  %v751_v58 = vld [vmem:[%s1016_s3 + $0x8] sm:$0xff]   ;;  %p836_p4 = por %p835_p3, %p834_p2 }
  0x2d   :  { %660 = vmatpush3.bf16.msra.mxu0 %v736_v2  ;;  %668 = vmatpush3.bf16.msra.mxu1 %v738_v5  ;;  %v750_v57 = vld [vmem:[%s1016_s3 + $0x10] sm:$0xff]   ;;  %v752_v59 = vld [vmem:[%s1016_s3] sm:$0xff]   ;;  %v757_v38 = vld [vmem:[#allocation5 + $0x18] sm:$0xff]  }
  0x2e   :  { %685 = vmatprep.subr.bf16.mxu0 %v862_v0  ;;  %669 = vmatprep.subr.bf16.mxu1 %v862_v0  ;;  %v600_v60 = vld [vmem:[#allocation7 + $0x3] ss:$0 sm:$0xff]  ;;  %v758_v39 = vld [vmem:[#allocation5 + $0x10] sm:$0xff]   ;;  %p837_p5 = pnand %p836_p4, %p830_p1 }
  0x30   :  { %662 = vmatmul.mubr.msk.bf16.vlgmr.msra.gmra.mxu0 %vm93_vm1, %v69_v3 }
  0x31   :  { %701 = vmatprep.mubr.msk.bf16.mxu0 %vm863_vm0, %v862_v0  ;;  %670 = vmatpush3.bf16.msra.mxu1 %v739_v6 }
  0x32   :  { %671 = vmatprep.subr.bf16.mxu1 %v862_v0  ;;  %686 = vmatpush3.bf16.msra.mxu0 %v745_v52 }
  0x33   :  { %687 = vmatprep.subr.bf16.mxu0 %v862_v0 }
  0x35   :  { %672 = vmatpush3.bf16.msra.mxu1 %v740_v7 }
  0x36   :  { %673 = vmatprep.subr.bf16.mxu1 %v862_v0  ;;  %688 = vmatpush3.bf16.msra.mxu0 %v746_v53 }
  0x37   :  { %689 = vmatprep.subr.bf16.mxu0 %v862_v0 }
  0x39   :  { %674 = vmatpush3.bf16.msra.mxu1 %v741_v8 }
  0x3a   :  { %675 = vmatprep.subr.bf16.mxu1 %v862_v0  ;;  %690 = vmatpush3.bf16.msra.mxu0 %v747_v54 }
  0x3b   :  { %691 = vmatprep.subr.bf16.mxu0 %v862_v0 }
  0x3d   :  { %676 = vmatpush3.bf16.msra.mxu1 %v742_v9 }
  0x3e   :  { %677 = vmatprep.subr.bf16.mxu1 %v862_v0  ;;  %692 = vmatpush3.bf16.msra.mxu0 %v748_v55 }
  0x3f   :  { %693 = vmatprep.subr.bf16.mxu0 %v862_v0 }
  0x41   :  { %678 = vmatpush3.bf16.msra.mxu1 %v743_v10 }
  0x42   :  { %679 = vmatprep.subr.bf16.mxu1 %v862_v0  ;;  %694 = vmatpush3.bf16.msra.mxu0 %v749_v56 }
  0x43   :  { %695 = vmatprep.subr.bf16.mxu0 %v862_v0 }
  0x45   :  { %680 = vmatpush3.bf16.msra.mxu1 %v744_v11 }
  0x46   :  { %705 = vmatprep.subr.bf16.mxu1 %v862_v0  ;;  %696 = vmatpush3.bf16.msra.mxu0 %v750_v57 }
  0x47   :  { %697 = vmatprep.subr.bf16.mxu0 %v862_v0 }
  0x4a   :  { %698 = vmatpush3.bf16.msra.mxu0 %v751_v58 }
  0x4b   :  { %699 = vmatprep.subr.bf16.mxu0 %v862_v0 }
  0x4e   :  { %700 = vmatpush3.bf16.msra.mxu0 %v752_v59 }
  0xf0   :  { %v131_v13 = vpop.f32.mrf.mxu0 }
  0xf1   :  { %v132_v14 = vadd.f32 %v596_v12, %v131_v13 }
  0xf2   :  { %v663_v15 = vpop.f32.mrf.mxu0 }
  0xf3   :  { %v137_v16 = vmax.f32 %v132_v14, 0.0 }
  0xf4   :  { %v134_v17 = vpop.f32.mrf.mxu0 }
  0xf5   :  { %v138_v18 = vrot.slane %v137_v16, 4  ;;  %v144_v19 = vmul.f32 %v137_v16, %v137_v16 }
  0xf6   :  { %v664_v20 = vpop.f32.mrf.mxu0 }
  0xf7   :  { %v139_v21 = vadd.f32 %v138_v18, %v137_v16  ;;  %v145_v22 = vrot.slane %v144_v19, 4 }
  0xf9   :  { %v140_v23 = vrot.slane %v139_v21, 2  ;;  %v146_v24 = vadd.f32 %v145_v22, %v144_v19 }
  0xfb   :  { %v141_v25 = vadd.f32 %v140_v23, %v139_v21  ;;  %v147_v26 = vrot.slane %v146_v24, 2  ;;  %v189_v23 = vld [vmem:[#allocation7 + $0x4] sm:$0x1] }
  0xfd   :  { %v142_v27 = vrot.slane %v141_v25, 1  ;;  %v148_v28 = vadd.f32 %v147_v26, %v146_v24  ;;  %v190_v26 = vld [vmem:[#allocation7 + $0x5] sm:$0x1] }
  0xff   :  { %v149_v29 = vrot.slane %v148_v28, 1  ;;  %v143_v30 = vadd.f32 %v142_v27, %v141_v25 }
 0x101   :  { %v150_v31 = vadd.f32 %v149_v29, %v148_v28  ;;  %v151_v32 = vmul.f32 0.125, %v143_v30 }
 0x103   :  { %v152_v33 = vmul.f32 0.125, %v150_v31  ;;  %v153_v34 = vmul.f32 %v151_v32, %v151_v32 }
 0x105   :  { %v154_v35 = vsub.f32 %v152_v33, %v153_v34  ;;  %v753_v34 = vld [vmem:[#allocation5 + $0x38] sm:$0xff]  }
 0x107   :  { %v155_v36 = vmax.f32 %v154_v35, 0.0  ;;  %v754_v35 = vld [vmem:[#allocation5 + $0x30] sm:$0xff]  }
 0x109   :  { %v156_v37 = vadd.f32 1e-05, %v155_v36  ;;  %v755_v36 = vld [vmem:[#allocation5 + $0x28] sm:$0xff]  }
 0x10b   :  { %761 = vrsqrt.f32 %v156_v37  ;;  %v756_v37 = vld [vmem:[#allocation5 + $0x20] sm:$0xff]  }
 0x118   :  { %v762_v42 = vpop.eup %761 }
 0x119   :  { %v158_v43 = vmul.f32 %v762_v42, %v75_v40  ;;  %v759_v40 = vld [vmem:[#allocation5 + $0x8] sm:$0xff]   ;;  %v760_v42 = vld [vmem:[#allocation5] sm:$0xff]  }
 0x11b   :  { %v159_v45 = vmul.f32 %v158_v43, %v151_v32  ;;  %v164_v46 = vrot.slane %v158_v43, %v959_v41  ;;  %v609_v43 = vld [vmem:[#allocation7 + $0x6] ss:$0 sm:$0xff] }
 0x11d   :  { %v160_v47 = vsub.f32 %v76_v44, %v159_v45  ;;  %v165_v48 = vmul.f32 %v164_v46, %v137_v16 }
 0x11f   :  { %v169_v49 = vrot.slane %v160_v47, %v959_v41 }
 0x121   :  { %v170_v50 = vadd.f32 %v169_v49, %v165_v48 }
 0x123   :  { %v171_v51 = vpack.c.bf16 %v170_v50, %v170_v50 }
 0x125   :  { %682 = vmatmul.mubr.bf16.vlgmr.msra.gmra.mxu1 %v171_v51 }
 0x126   :  { %721 = vmatprep.mubr.msk.bf16.mxu1 %vm863_vm0, %v862_v0  ;;  %706 = vmatpush3.bf16.msra.mxu1 %v753_v34 }
 0x127   :  { %707 = vmatprep.subr.bf16.mxu1 %v862_v0 }
 0x12a   :  { %708 = vmatpush3.bf16.msra.mxu1 %v754_v35 }
 0x12b   :  { %709 = vmatprep.subr.bf16.mxu1 %v862_v0 }
 0x12e   :  { %710 = vmatpush3.bf16.msra.mxu1 %v755_v36 }
 0x12f   :  { %711 = vmatprep.subr.bf16.mxu1 %v862_v0 }
 0x132   :  { %712 = vmatpush3.bf16.msra.mxu1 %v756_v37 }
 0x133   :  { %713 = vmatprep.subr.bf16.mxu1 %v862_v0 }
 0x136   :  { %714 = vmatpush3.bf16.msra.mxu1 %v757_v38 }
 0x137   :  { %715 = vmatprep.subr.bf16.mxu1 %v862_v0 }
 0x13a   :  { %716 = vmatpush3.bf16.msra.mxu1 %v758_v39 }
 0x13b   :  { %717 = vmatprep.subr.bf16.mxu1 %v862_v0 }
 0x13e   :  { %718 = vmatpush3.bf16.msra.mxu1 %v759_v40 }
 0x13f   :  { %719 = vmatprep.subr.bf16.mxu1 %v862_v0 }
 0x142   :  { %720 = vmatpush3.bf16.msra.mxu1 %v760_v42 }
 0x1e5   :  { %v277_v61 = vpop.f32.mrf.mxu1 }
 0x1e6   :  { %v278_v62 = vadd.f32 %v600_v60, %v277_v61 }
 0x1e7   :  { %v683_v63 = vpop.f32.mrf.mxu1 }
 0x1e8   :  { %v283_v1 = vmax.f32 %v278_v62, 0.0 }
 0x1e9   :  { %v280_v2 = vpop.f32.mrf.mxu1 }
 0x1ea   :  { %v284_v3 = vrot.slane %v283_v1, 4  ;;  %v290_v4 = vmul.f32 %v283_v1, %v283_v1 }
 0x1eb   :  { %v684_v5 = vpop.f32.mrf.mxu1 }
 0x1ec   :  { %v285_v6 = vadd.f32 %v284_v3, %v283_v1  ;;  %v291_v7 = vrot.slane %v290_v4, 4  ;;  %v335_v5 = vld [vmem:[#allocation7 + $0x7] sm:$0x1] }
 0x1ee   :  { %v286_v8 = vrot.slane %v285_v6, 2  ;;  %v292_v9 = vadd.f32 %v291_v7, %v290_v4 }
 0x1f0   :  { %v287_v10 = vadd.f32 %v286_v8, %v285_v6  ;;  %v293_v11 = vrot.slane %v292_v9, 2  ;;  %v336_v8 = vld [vmem:[#allocation7 + $0x8] sm:$0x1] }
 0x1f2   :  { %v288_v12 = vrot.slane %v287_v10, 1  ;;  %v294_v13 = vadd.f32 %v293_v11, %v292_v9 }
 0x1f4   :  { %v289_v14 = vadd.f32 %v288_v12, %v287_v10  ;;  %v295_v15 = vrot.slane %v294_v13, 1 }
 0x1f6   :  { %v296_v16 = vadd.f32 %v295_v15, %v294_v13  ;;  %v297_v17 = vmul.f32 0.125, %v289_v14 }
 0x1f8   :  { %v298_v18 = vmul.f32 0.125, %v296_v16  ;;  %v299_v19 = vmul.f32 %v297_v17, %v297_v17  ;;  %v618_v16 = vld [vmem:[%s1019_s6] ss:$0 sm:$0xff] }
 0x1fa   :  { %v300_v20 = vsub.f32 %v298_v18, %v299_v19 }
 0x1fc   :  { %v301_v21 = vmax.f32 %v300_v20, 0.0 }
 0x1fe   :  { %v302_v22 = vadd.f32 1e-05, %v301_v21 }
 0x200   :  { %763 = vrsqrt.f32 %v302_v22 }
 0x20d   :  { %v764_v24 = vpop.eup %763 }
 0x20e   :  { %v304_v25 = vmul.f32 %v764_v24, %v189_v23 }
 0x210   :  { %v310_v27 = vrot.slane %v304_v25, %v959_v41  ;;  %v305_v28 = vmul.f32 %v304_v25, %v297_v17 }
 0x212   :  { %v306_v29 = vsub.f32 %v190_v26, %v305_v28  ;;  %v311_v30 = vmul.f32 %v310_v27, %v283_v1 }
 0x214   :  { %v315_v31 = vrot.slane %v306_v29, %v959_v41 }
 0x216   :  { %v316_v32 = vadd.f32 %v315_v31, %v311_v30 }
 0x218   :  { %v317_v33 = vpack.c.bf16 %v316_v32, %v316_v32 }
 0x21a   :  { %702 = vmatmul.mubr.bf16.vlgmr.msra.gmra.mxu0 %v317_v33 }
 0x2da   :  { %v423_v44 = vpop.f32.mrf.mxu0 }
 0x2db   :  { %v424_v45 = vadd.f32 %v609_v43, %v423_v44 }
 0x2dc   :  { %v703_v46 = vpop.f32.mrf.mxu0 }
 0x2dd   :  { %v429_v47 = vmax.f32 %v424_v45, 0.0 }
 0x2de   :  { %v426_v48 = vpop.f32.mrf.mxu0 }
 0x2df   :  { %v430_v49 = vrot.slane %v429_v47, 4  ;;  %v436_v50 = vmul.f32 %v429_v47, %v429_v47 }
 0x2e0   :  { %v704_v51 = vpop.f32.mrf.mxu0 }
 0x2e1   :  { %v431_v52 = vadd.f32 %v430_v49, %v429_v47  ;;  %v437_v53 = vrot.slane %v436_v50, 4 }
 0x2e3   :  { %v432_v54 = vrot.slane %v431_v52, 2  ;;  %v438_v55 = vadd.f32 %v437_v53, %v436_v50 }
 0x2e5   :  { %v433_v56 = vadd.f32 %v432_v54, %v431_v52  ;;  %v439_v57 = vrot.slane %v438_v55, 2 }
 0x2e7   :  { %v434_v58 = vrot.slane %v433_v56, 1  ;;  %v440_v59 = vadd.f32 %v439_v57, %v438_v55 }
 0x2e9   :  { %v435_v60 = vadd.f32 %v434_v58, %v433_v56  ;;  %v441_v0 = vrot.slane %v440_v59, 1 }
 0x2eb   :  { %v442_v61 = vadd.f32 %v441_v0, %v440_v59  ;;  %v443_v62 = vmul.f32 0.125, %v435_v60 }
 0x2ed   :  { %v444_v63 = vmul.f32 0.125, %v442_v61  ;;  %v445_v1 = vmul.f32 %v443_v62, %v443_v62 }
 0x2ef   :  { %v446_v2 = vsub.f32 %v444_v63, %v445_v1 }
 0x2f1   :  { %v447_v3 = vmax.f32 %v446_v2, 0.0 }
 0x2f3   :  { %v448_v4 = vadd.f32 1e-05, %v447_v3 }
 0x2f5   :  { %765 = vrsqrt.f32 %v448_v4 }
 0x302   :  { %v766_v6 = vpop.eup %765 }
 0x303   :  { %v450_v7 = vmul.f32 %v766_v6, %v335_v5 }
 0x305   :  { %v456_v9 = vrot.slane %v450_v7, %v959_v41  ;;  %v451_v10 = vmul.f32 %v450_v7, %v443_v62 }
 0x307   :  { %v452_v11 = vsub.f32 %v336_v8, %v451_v10  ;;  %v457_v12 = vmul.f32 %v456_v9, %v429_v47 }
 0x309   :  { %v461_v13 = vrot.slane %v452_v11, %v959_v41 }
 0x30b   :  { %v462_v14 = vadd.f32 %v461_v13, %v457_v12 }
 0x30d   :  { %v463_v15 = vpack.c.bf16 %v462_v14, %v462_v14 }
 0x30f   :  { %722 = vmatmul.mubr.bf16.vlgmr.msra.gmra.mxu1 %v463_v15 }
 0x3cf   :  { %v569_v17 = vpop.f32.mrf.mxu1 }
 0x3d0   :  { %v570_v18 = vadd.f32 %v618_v16, %v569_v17 }
 0x3d1   :  { %v723_v19 = vpop.f32.mrf.mxu1 }
 0x3d2   :  { %v575_v20 = vmul.f32 0.5, %v570_v18 }
 0x3d3   :  { %v572_v21 = vpop.f32.mrf.mxu1 }
 0x3d4   :  { %767 = vtanh.f32 %v575_v20 }
 0x3d5   :  { %v724_v22 = vpop.f32.mrf.mxu1 }
 0x3e1   :  { %v768_v23 = vpop.eup %767 }
 0x3e2   :  { %v577_v24 = vmul.f32 0.5, %v768_v23 }
 0x3e4   :  { %v578_v25 = vadd.f32 0.5, %v577_v24 }
 0x3e6   :  { %579 = vst [vmem:[#allocation8] sm:$0xff] %v578_v25 }
 0x3e7   :  { %840 = shalt.err (!%p837_p5)
}
 0x3e8   :  { %589 = dma.vmem_to_hbm [thread:$0]  %s587_s24, 128, %s1020_s7, [#allocation4]  }
 0x3e9   :  { %853 = dma.done.wait [#allocation4], 128  }
 0x3ea   :  { %854 = vsyncadd [#allocation4], 4294967168 }
 0x3eb   :  { %593 = vsyncpa [#allocation3], 1 }
 0x3ec   :  { %594 = vsyncpa [#allocation6], 1 }
 0x3ed   :  { %595 = vsyncpa [#allocation4], 1 }

</bundles_post_ra>
